<compile_context>
chip_gen: v6e
topology: v6e:2x2x1
jax: 0.10.0
libtpu: 0.0.40
codegen_flags: <defaults>
</compile_context>

<pallas_src>
import jax
import jax.numpy as jnp
from jax.experimental import pallas as pl
from jax.experimental.pallas import tpu as pltpu


def _round_up(x, m):
    return ((x + m - 1) // m) * m


def _mlp_kernel(x_ref, w1_ref, b1_ref, w2_ref, b2_ref, w3_ref, b3_ref,
                wc_ref, bc_ref, o_ref):
    # x_ref: (tt, idim) bf16 row tile; weights bf16 (resident, constant index_map);
    # biases f32; o_ref: (odim, tt) f32 (lane dim = time tile).
    x = x_ref[...]
    h = jnp.dot(x, w1_ref[...], preferred_element_type=jnp.float32) + b1_ref[...]
    h = jnp.maximum(h, 0.0).astype(jnp.bfloat16)
    h = jnp.dot(h, w2_ref[...], preferred_element_type=jnp.float32) + b2_ref[...]
    h = jnp.maximum(h, 0.0).astype(jnp.bfloat16)
    h = jnp.dot(h, w3_ref[...], preferred_element_type=jnp.float32) + b3_ref[...]
    h = jnp.maximum(h, 0.0).astype(jnp.bfloat16)
    y = jnp.dot(h, wc_ref[...], preferred_element_type=jnp.float32) + bc_ref[...]  # (tt, ncpad) f32
    # Tile-aligned transpose (tt, ncpad) -> (ncpad, tt); keep only the real classes.
    yt = y.T
    o_ref[...] = yt[: o_ref.shape[0], :].astype(o_ref.dtype)


def classification_forward(audio_feat, params, *, tt=512):
    """
    audio_feat: (B, T, *) float32 -- flattened from dim 2 onward (torch flatten(start_dim=2))
    params: dict with w1,b1,w2,b2,w3,b3,wc,bc (weights stored (in, out), biases (1, out))
    returns: (B, odim, T) float32  (== torch's x.transpose(1, 2))
    """
    B, T = audio_feat.shape[0], audio_feat.shape[1]
    x = audio_feat.reshape(B, T, -1)          # (B, T, idim)
    idim = x.shape[-1]
    hidden = params["w1"].shape[1]
    odim = params["wc"].shape[1]

    # Time tile: multiple of 128 (keeps the in-kernel transpose and the output
    # store (8,128)-tile aligned and fills the MXU M dimension); cap at 512.
    tt = int(min(tt, _round_up(max(T, 1), 128)))
    tt = _round_up(tt, 128)
    Tp = _round_up(T, tt)
    ncpad = _round_up(odim, 128)              # classifier columns padded to lane width

    # bf16 inputs/weights for native MXU throughput; biases & accumulation stay f32.
    x_b = x.astype(jnp.bfloat16)
    if Tp != T:
        x_b = jnp.pad(x_b, ((0, 0), (0, Tp - T), (0, 0)))
    w1 = params["w1"].astype(jnp.bfloat16)
    w2 = params["w2"].astype(jnp.bfloat16)
    w3 = params["w3"].astype(jnp.bfloat16)
    wc = jnp.pad(params["wc"], ((0, 0), (0, ncpad - odim))).astype(jnp.bfloat16)
    b1 = params["b1"].astype(jnp.float32)
    b2 = params["b2"].astype(jnp.float32)
    b3 = params["b3"].astype(jnp.float32)
    bc = jnp.pad(params["bc"], ((0, 0), (0, ncpad - odim))).astype(jnp.float32)

    # Grid: (batch, time tiles) -- both parallel so megacore (v7x: 2 TCs) can shard.
    grid = (B, Tp // tt)

    # Explicit VMEM budget (critical on v7x: 64 MiB physical, 32 MiB default scope).
    wbytes = 2 * (w1.size + w2.size + w3.size + wc.size) * 2      # bf16, double-buffered
    bbytes = 2 * (b1.size + b2.size + b3.size + bc.size) * 4
    xbytes = 2 * tt * idim * 2
    obytes = 2 * odim * tt * 4
    tmpbytes = 8 * tt * max(hidden, ncpad) * 4                    # in-kernel intermediates
    vmem_limit = int(min(max(2 * (wbytes + bbytes + xbytes + obytes + tmpbytes),
                             32 * 1024 * 1024),
                         64 * 1024 * 1024))

    out = pl.pallas_call(
        _mlp_kernel,
        out_shape=jax.ShapeDtypeStruct((B, odim, Tp), jnp.float32),
        grid_spec=pltpu.PrefetchScalarGridSpec(
            num_scalar_prefetch=0,
            grid=grid,
            in_specs=[
                pl.BlockSpec((None, tt, idim), lambda b, t: (b, t, 0)),   # x time tile
                pl.BlockSpec((idim, hidden), lambda b, t: (0, 0)),        # w1 (resident)
                pl.BlockSpec((1, hidden), lambda b, t: (0, 0)),           # b1
                pl.BlockSpec((hidden, hidden), lambda b, t: (0, 0)),      # w2
                pl.BlockSpec((1, hidden), lambda b, t: (0, 0)),           # b2
                pl.BlockSpec((hidden, hidden), lambda b, t: (0, 0)),      # w3
                pl.BlockSpec((1, hidden), lambda b, t: (0, 0)),           # b3
                pl.BlockSpec((hidden, ncpad), lambda b, t: (0, 0)),       # wc (col-padded)
                pl.BlockSpec((1, ncpad), lambda b, t: (0, 0)),            # bc
            ],
            out_specs=pl.BlockSpec((None, odim, tt), lambda b, t: (b, 0, t)),
        ),
        compiler_params=pltpu.CompilerParams(
            dimension_semantics=("parallel", "parallel"),
            vmem_limit_bytes=vmem_limit),
    )(x_b, w1, b1, w2, b2, w3, b3, wc, bc)

    return out[:, :, :T]                      # drop time padding -> (B, odim, T)


def init_params(key, idim, odim, hidden_dim):
    """Deterministic init mimicking torch.nn.Linear (uniform +/- 1/sqrt(fan_in)).
    Weights stored as (in, out) for the kernel (torch stores (out, in))."""
    ks = jax.random.split(key, 8)

    def linear(kw, kb, fan_in, fan_out):
        bound = 1.0 / jnp.sqrt(fan_in)
        w = jax.random.uniform(kw, (fan_in, fan_out), jnp.float32, -bound, bound)
        b = jax.random.uniform(kb, (1, fan_out), jnp.float32, -bound, bound)
        return w, b

    w1, b1 = linear(ks[0], ks[1], idim, hidden_dim)
    w2, b2 = linear(ks[2], ks[3], hidden_dim, hidden_dim)
    w3, b3 = linear(ks[4], ks[5], hidden_dim, hidden_dim)
    wc, bc = linear(ks[6], ks[7], hidden_dim, odim)
    return dict(w1=w1, b1=b1, w2=w2, b2=b2, w3=w3, b3=b3, wc=wc, bc=bc)


def _ref_forward(audio_feat, params):
    """Plain-JAX reference with the same bf16-matmul / f32-accumulate numerics."""
    x = audio_feat.reshape(audio_feat.shape[0], audio_feat.shape[1], -1)

    def lin(h, w, b):
        return jnp.dot(h.astype(jnp.bfloat16), w.astype(jnp.bfloat16),
                       preferred_element_type=jnp.float32) + b

    h = jnp.maximum(lin(x, params["w1"], params["b1"]), 0.0)
    h = jnp.maximum(lin(h, params["w2"], params["b2"]), 0.0)
    h = jnp.maximum(lin(h, params["w3"], params["b3"]), 0.0)
    y = lin(h, params["wc"], params["bc"])
    return jnp.transpose(y, (0, 2, 1))


if __name__ == "__main__":
    key = jax.random.PRNGKey(0)
    k_in, k_par = jax.random.split(key)

    # Small shapes: batch=2, seq=8, feature dims (4, 8) -> idim=32, hidden=64, odim=16
    B, T, F1, F2 = 2, 8, 4, 8
    idim, hidden_dim, odim = F1 * F2, 64, 16

    audio_feat = jax.random.normal(k_in, (B, T, F1, F2), jnp.float32)
    params = init_params(k_par, idim, odim, hidden_dim)

    out = classification_forward(audio_feat, params)
    out = jax.block_until_ready(out)

    ref = _ref_forward(audio_feat, params)
    assert out.shape == (B, odim, T), out.shape
    assert jnp.allclose(out, ref, atol=1e-3, rtol=1e-3), float(jnp.max(jnp.abs(out - ref)))

    print("KERNEL_OK")
</pallas_src>

<mosaic_0001>
module attributes {stable_mosaic.version = 11 : i64} {
  func.func @_mlp_kernel(%arg0: i32, %arg1: i32, %arg2: memref<1x128x32xbf16, #tpu.memory_space<vmem>>, %arg3: memref<32x64xbf16, #tpu.memory_space<vmem>>, %arg4: memref<1x64xf32, #tpu.memory_space<vmem>>, %arg5: memref<64x64xbf16, #tpu.memory_space<vmem>>, %arg6: memref<1x64xf32, #tpu.memory_space<vmem>>, %arg7: memref<64x64xbf16, #tpu.memory_space<vmem>>, %arg8: memref<1x64xf32, #tpu.memory_space<vmem>>, %arg9: memref<64x128xbf16, #tpu.memory_space<vmem>>, %arg10: memref<1x128xf32, #tpu.memory_space<vmem>>, %arg11: memref<1x16x128xf32, #tpu.memory_space<vmem>>) attributes {dimension_semantics = [#tpu.dimension_semantics<parallel>, #tpu.dimension_semantics<parallel>], iteration_bounds = array<i64: 2, 1>, scalar_prefetch = 0 : i64, scratch_operands = 0 : i64, tpu.core_type = #tpu.core_type<tc>, window_params = [{transform_indices = @transform_0, window_bounds = array<i64: 1, 128, 32>}, {pipeline_mode = #tpu.pipeline_mode<synchronous>, transform_indices = @transform_1, window_bounds = array<i64: 32, 64>}, {pipeline_mode = #tpu.pipeline_mode<synchronous>, transform_indices = @transform_2, window_bounds = array<i64: 1, 64>}, {pipeline_mode = #tpu.pipeline_mode<synchronous>, transform_indices = @transform_3, window_bounds = array<i64: 64, 64>}, {pipeline_mode = #tpu.pipeline_mode<synchronous>, transform_indices = @transform_4, window_bounds = array<i64: 1, 64>}, {pipeline_mode = #tpu.pipeline_mode<synchronous>, transform_indices = @transform_5, window_bounds = array<i64: 64, 64>}, {pipeline_mode = #tpu.pipeline_mode<synchronous>, transform_indices = @transform_6, window_bounds = array<i64: 1, 64>}, {pipeline_mode = #tpu.pipeline_mode<synchronous>, transform_indices = @transform_7, window_bounds = array<i64: 64, 128>}, {pipeline_mode = #tpu.pipeline_mode<synchronous>, transform_indices = @transform_8, window_bounds = array<i64: 1, 128>}, {transform_indices = @transform_9, window_bounds = array<i64: 1, 16, 128>}]} {
    %c0 = arith.constant 0 : index
    %c0_0 = arith.constant 0 : index
    %c0_1 = arith.constant 0 : index
    %0 = vector.load %arg2[%c0, %c0_0, %c0_1] : memref<1x128x32xbf16, #tpu.memory_space<vmem>>, vector<1x128x32xbf16>
    %1 = vector.shape_cast %0 : vector<1x128x32xbf16> to vector<128x32xbf16>
    %c0_2 = arith.constant 0 : index
    %c0_3 = arith.constant 0 : index
    %2 = vector.load %arg3[%c0_2, %c0_3] : memref<32x64xbf16, #tpu.memory_space<vmem>>, vector<32x64xbf16>
    %cst = arith.constant dense<0.000000e+00> : vector<128x64xf32>
    %3 = tpu.matmul %1, %2, %cst {dimension_numbers = #tpu.dot_dimension_numbers<[1], [0], [0], [1], [0, 0, 1, 1], [], []>} : vector<128x32xbf16>, vector<32x64xbf16>, vector<128x64xf32> -> vector<128x64xf32>
    %c0_4 = arith.constant 0 : index
    %c0_5 = arith.constant 0 : index
    %4 = vector.load %arg4[%c0_4, %c0_5] : memref<1x64xf32, #tpu.memory_space<vmem>>, vector<1x64xf32>
    %5 = vector.broadcast %4 : vector<1x64xf32> to vector<128x64xf32>
    %6 = arith.addf %3, %5 : vector<128x64xf32>
    %cst_6 = arith.constant 0.000000e+00 : f32
    %7 = vector.broadcast %cst_6 : f32 to vector<128x64xf32>
    %8 = arith.maximumf %6, %7 : vector<128x64xf32>
    %9 = arith.truncf %8 : vector<128x64xf32> to vector<128x64xbf16>
    %c0_7 = arith.constant 0 : index
    %c0_8 = arith.constant 0 : index
    %10 = vector.load %arg5[%c0_7, %c0_8] : memref<64x64xbf16, #tpu.memory_space<vmem>>, vector<64x64xbf16>
    %cst_9 = arith.constant dense<0.000000e+00> : vector<128x64xf32>
    %11 = tpu.matmul %9, %10, %cst_9 {dimension_numbers = #tpu.dot_dimension_numbers<[1], [0], [0], [1], [0, 0, 1, 1], [], []>} : vector<128x64xbf16>, vector<64x64xbf16>, vector<128x64xf32> -> vector<128x64xf32>
    %c0_10 = arith.constant 0 : index
    %c0_11 = arith.constant 0 : index
    %12 = vector.load %arg6[%c0_10, %c0_11] : memref<1x64xf32, #tpu.memory_space<vmem>>, vector<1x64xf32>
    %13 = vector.broadcast %12 : vector<1x64xf32> to vector<128x64xf32>
    %14 = arith.addf %11, %13 : vector<128x64xf32>
    %cst_12 = arith.constant 0.000000e+00 : f32
    %15 = vector.broadcast %cst_12 : f32 to vector<128x64xf32>
    %16 = arith.maximumf %14, %15 : vector<128x64xf32>
    %17 = arith.truncf %16 : vector<128x64xf32> to vector<128x64xbf16>
    %c0_13 = arith.constant 0 : index
    %c0_14 = arith.constant 0 : index
    %18 = vector.load %arg7[%c0_13, %c0_14] : memref<64x64xbf16, #tpu.memory_space<vmem>>, vector<64x64xbf16>
    %cst_15 = arith.constant dense<0.000000e+00> : vector<128x64xf32>
    %19 = tpu.matmul %17, %18, %cst_15 {dimension_numbers = #tpu.dot_dimension_numbers<[1], [0], [0], [1], [0, 0, 1, 1], [], []>} : vector<128x64xbf16>, vector<64x64xbf16>, vector<128x64xf32> -> vector<128x64xf32>
    %c0_16 = arith.constant 0 : index
    %c0_17 = arith.constant 0 : index
    %20 = vector.load %arg8[%c0_16, %c0_17] : memref<1x64xf32, #tpu.memory_space<vmem>>, vector<1x64xf32>
    %21 = vector.broadcast %20 : vector<1x64xf32> to vector<128x64xf32>
    %22 = arith.addf %19, %21 : vector<128x64xf32>
    %cst_18 = arith.constant 0.000000e+00 : f32
    %23 = vector.broadcast %cst_18 : f32 to vector<128x64xf32>
    %24 = arith.maximumf %22, %23 : vector<128x64xf32>
    %25 = arith.truncf %24 : vector<128x64xf32> to vector<128x64xbf16>
    %c0_19 = arith.constant 0 : index
    %c0_20 = arith.constant 0 : index
    %26 = vector.load %arg9[%c0_19, %c0_20] : memref<64x128xbf16, #tpu.memory_space<vmem>>, vector<64x128xbf16>
    %cst_21 = arith.constant dense<0.000000e+00> : vector<128x128xf32>
    %27 = tpu.matmul %25, %26, %cst_21 {dimension_numbers = #tpu.dot_dimension_numbers<[1], [0], [0], [1], [0, 0, 1, 1], [], []>} : vector<128x64xbf16>, vector<64x128xbf16>, vector<128x128xf32> -> vector<128x128xf32>
    %c0_22 = arith.constant 0 : index
    %c0_23 = arith.constant 0 : index
    %28 = vector.load %arg10[%c0_22, %c0_23] : memref<1x128xf32, #tpu.memory_space<vmem>>, vector<1x128xf32>
    %29 = vector.broadcast %28 : vector<1x128xf32> to vector<128x128xf32>
    %30 = arith.addf %27, %29 : vector<128x128xf32>
    %31 = tpu.transpose %30, [1, 0] : vector<128x128xf32> -> vector<128x128xf32>
    %32 = vector.extract_strided_slice %31 {offsets = [0, 0], sizes = [16, 128], strides = [1, 1]} : vector<128x128xf32> to vector<16x128xf32>
    %c0_24 = arith.constant 0 : index
    %c0_25 = arith.constant 0 : index
    %c0_26 = arith.constant 0 : index
    %33 = vector.load %arg11[%c0_24, %c0_25, %c0_26] : memref<1x16x128xf32, #tpu.memory_space<vmem>>, vector<1x16x128xf32>
    %34 = vector.shape_cast %33 : vector<1x16x128xf32> to vector<16x128xf32>
    %35 = vector.shape_cast %32 : vector<16x128xf32> to vector<1x16x128xf32>
    tpu.vector_store %arg11[%c0_24, %c0_25, %c0_26], %35 {strides = array<i32>} : memref<1x16x128xf32, #tpu.memory_space<vmem>>, vector<1x16x128xf32>,
    return
  }
  func.func @transform_0(%arg0: i32, %arg1: i32) -> (i32, i32, i32) {
    %c0_i32 = arith.constant 0 : i32
    %c0_i32_0 = arith.constant 0 : i32
    return %arg0, %arg1, %c0_i32 : i32, i32, i32
  }
  func.func @transform_1(%arg0: i32, %arg1: i32) -> (i32, i32) {
    %c0_i32 = arith.constant 0 : i32
    %c0_i32_0 = arith.constant 0 : i32
    %c0_i32_1 = arith.constant 0 : i32
    return %c0_i32, %c0_i32_0 : i32, i32
  }
  func.func @transform_2(%arg0: i32, %arg1: i32) -> (i32, i32) {
    %c0_i32 = arith.constant 0 : i32
    %c0_i32_0 = arith.constant 0 : i32
    %c0_i32_1 = arith.constant 0 : i32
    return %c0_i32, %c0_i32_0 : i32, i32
  }
  func.func @transform_3(%arg0: i32, %arg1: i32) -> (i32, i32) {
    %c0_i32 = arith.constant 0 : i32
    %c0_i32_0 = arith.constant 0 : i32
    %c0_i32_1 = arith.constant 0 : i32
    return %c0_i32, %c0_i32_0 : i32, i32
  }
  func.func @transform_4(%arg0: i32, %arg1: i32) -> (i32, i32) {
    %c0_i32 = arith.constant 0 : i32
    %c0_i32_0 = arith.constant 0 : i32
    %c0_i32_1 = arith.constant 0 : i32
    return %c0_i32, %c0_i32_0 : i32, i32
  }
  func.func @transform_5(%arg0: i32, %arg1: i32) -> (i32, i32) {
    %c0_i32 = arith.constant 0 : i32
    %c0_i32_0 = arith.constant 0 : i32
    %c0_i32_1 = arith.constant 0 : i32
    return %c0_i32, %c0_i32_0 : i32, i32
  }
  func.func @transform_6(%arg0: i32, %arg1: i32) -> (i32, i32) {
    %c0_i32 = arith.constant 0 : i32
    %c0_i32_0 = arith.constant 0 : i32
    %c0_i32_1 = arith.constant 0 : i32
    return %c0_i32, %c0_i32_0 : i32, i32
  }
  func.func @transform_7(%arg0: i32, %arg1: i32) -> (i32, i32) {
    %c0_i32 = arith.constant 0 : i32
    %c0_i32_0 = arith.constant 0 : i32
    %c0_i32_1 = arith.constant 0 : i32
    return %c0_i32, %c0_i32_0 : i32, i32
  }
  func.func @transform_8(%arg0: i32, %arg1: i32) -> (i32, i32) {
    %c0_i32 = arith.constant 0 : i32
    %c0_i32_0 = arith.constant 0 : i32
    %c0_i32_1 = arith.constant 0 : i32
    return %c0_i32, %c0_i32_0 : i32, i32
  }
  func.func @transform_9(%arg0: i32, %arg1: i32) -> (i32, i32, i32) {
    %c0_i32 = arith.constant 0 : i32
    %c0_i32_0 = arith.constant 0 : i32
    return %arg0, %c0_i32, %arg1 : i32, i32, i32
  }
}

</mosaic_0001>

<bundles_post_ra>
// kernel: tpu_custom_call.1
= control target key start
LH: loop header
LB: loop body
LE: loop exit
PB: predicated region body
PF: predicated region fallthrough
CT: control target
= control target key end

     0   :  { %14 = vsyncpa [#allocation3], 0  ;;  %s1864_s0 = inlined_call_operand.vmem [shape: bf16[2,128,32], index: 0, kind: input, shape index: {}]   ;;  %s1865_s1 = inlined_call_operand.vmem [shape: bf16[32,64], index: 1, kind: input, shape index: {}]   ;;  %s1866_s2 = inlined_call_operand.vmem [shape: f32[1,64], index: 2, kind: input, shape index: {}]   ;;  %s1867_s3 = inlined_call_operand.vmem [shape: bf16[64,64], index: 3, kind: input, shape index: {}]   ;;  %s1868_s4 = inlined_call_operand.vmem [shape: f32[1,64], index: 4, kind: input, shape index: {}]   ;;  %s1869_s5 = inlined_call_operand.vmem [shape: bf16[64,64], index: 5, kind: input, shape index: {}]   ;;  %s1870_s6 = inlined_call_operand.vmem [shape: f32[1,64], index: 6, kind: input, shape index: {}]   ;;  %s1871_s7 = inlined_call_operand.vmem [shape: bf16[64,128], index: 7, kind: input, shape index: {}]   ;;  %s1872_s8 = inlined_call_operand.vmem [shape: f32[1,128], index: 8, kind: input, shape index: {}]   ;;  %s1873_s9 = inlined_call_operand.hbm [shape: f32[2,16,128], index: 9, kind: output, shape index: {}]  }
   0x1   :  { %16 = vsyncpa [#allocation3 + $0x1], 0  ;;  %s1664_s30 = smov 0   ;;  %s1666_s10 = smov 0  }
   0x2   :  { %s1668_s11 = smov 0   ;;  %s1670_s12 = smov 0  }
   0x3   :  { %s1672_s13 = smov 0   ;;  %s1674_s14 = smov 0  }
   0x4 LB: > { %s1243_s15 = sadd.s32 4294967295, %s1609_s14   ;;  %s1244_s16 = sadd.s32 4294967294, %s1609_s14   ;;  %s1609_s14 = sphi %s1674_s14, %s22_s14   ;;  %s1605_s13 = sphi %s1672_s13, %s1880_s13   ;;  %s1601_s12 = sphi %s1670_s12, %s1879_s12   ;;  %s1597_s11 = sphi %s1668_s11, %s1878_s11   ;;  %s1593_s10 = sphi %s1666_s10, %s1877_s10   ;;  %s1589_s30 = sphi %s1664_s30, %s1876_s30  }
   0x5   : > { %s34_s17 = sadd.s32 1, %s1605_s13  ;;  %s239_s18 = sadd.s32 1, %s1597_s11 }
   0x6   : > { %p36_p0 = scmp.ge.s32.totalorder %s34_s17, 2  ;;  %p249_p1 = scmp.ne.s32.totalorder %s1597_s11, %s1593_s10 }
   0x7   : > { %p250_p2 = scmp.eq.s32.totalorder %s1243_s15, 1  ;;  %p255_p3 = scmp.ne.s32.totalorder %s1593_s10, %s1589_s30 }
   0x8   : > { %s1882_s17 = smov (%p36_p0, %s34_s17), 0  ;;  %p256_p5 = scmp.eq.s32.totalorder %s1244_s16, 1 }
   0x9   : > { %p1704_p4 = por %p250_p2, %p249_p1  ;;  %s234_s20 = ssub.s32 %s1605_s13, %s1882_s17 }
   0xa   : > { %p1247_p6 = scmp.ge.s32.totalorder %s1609_s14, 1  ;;  %p237_p7 = scmp.eq.s32.totalorder %s234_s20, 0 }
   0xb   : > { %p1711_p8 = por %p256_p5, %p255_p3  ;;  %p311_p9 = scmp.lt.s32.totalorder %s1609_s14, 3 }
   0xc   : > { %s1717_s22 = scalar_select %p237_p7, %s1597_s11, %s239_s18  }
   0xd   : > { %p312_p10 = pnand %p1247_p6, %p311_p9 }
   0xe   : > { %p352_p11 = scmp.lt.s32.totalorder (!%p312_p10), %s1601_s12, 1  ;;  %s348_s16 = sand.u32 (!%p312_p10), 1, %s1593_s10  }
   0xf   : > { %315 = sbr.rel (%p312_p10) target bundleno = 987 (0x3db), region = 56  ;;  %s1248_s18 = sshll.u32 (!%p312_p10), %s348_s16, 4 }
  0x10   : > { %s1315_s24 = sshll.u32 (!%p312_p10), %s1601_s12, 8  ;;  %s1819_s28 = scalar_lea.sflag (!%p312_p10), [#allocation3], %s348_s16 }
  0x14   : > { %v1511_v0 = vld [vmem:[%s1865_s1 + $0x8] sm:$0xff]   ;;  %v1512_v1 = vld [vmem:[%s1865_s1] sm:$0xff]   ;;  %s353_s27 = scalar_select %p352_p11, %s1601_s12, 1  ;;  %v1521_v2 = vld [vmem:[%s1867_s3 + $0x18] sm:$0xff]   ;;  %vm441_vm0 = vcmask 261120   ;;  %vm626_vm1 = vcmask 523264  }
  0x15   : > { %1362 = vmatprep.subr.bf16.mxu0 %v1511_v0  ;;  %1382 = vmatprep.subr.bf16.mxu1 %v1521_v2  ;;  %v1522_v11 = vld [vmem:[%s1867_s3 + $0x10] sm:$0xff]   ;;  %v1523_v12 = vld [vmem:[%s1867_s3 + $0x8] sm:$0xff]   ;;  %v1524_v13 = vld [vmem:[%s1867_s3] sm:$0xff]   ;;  %s1611_s12 = smov [#allocation2]  }
  0x16   : > { %1363 = vmatpush3.bf16.msra.mxu0 %v1511_v0  ;;  %s1314_s15 = sshll.u32 %s353_s27, 6  ;;  %1383 = vmatpush3.bf16.msra.mxu1 %v1521_v2  ;;  %v1525_v14 = vld [vmem:[%s1869_s5 + $0x18] sm:$0xff]   ;;  %v1526_v15 = vld [vmem:[%s1869_s5 + $0x10] sm:$0xff]   ;;  %v1527_v16 = vld [vmem:[%s1869_s5 + $0x8] sm:$0xff]   ;;  %s1817_s27 = scalar_lea.hbm %s1873_s9, %s1315_s24 }
  0x17   : > { %1364 = vmatprep.subr.bf16.mxu0 %v1512_v1  ;;  %s359_s20 = scalar_lea.vmem %s1864_s0, %s1314_s15  ;;  %1384 = vmatprep.subr.bf16.mxu1 %v1522_v11  ;;  %v1251_v19 = vld [vmem:[%s1866_s2] ss:$0 sm:$0xff]  ;;  %s1537_s15 = sshll.u32 %s1611_s12, 4  ;;  %s1538_s15 = int_to_ptr.vmem [resolvable:$false] %s1537_s15 }
  0x18   : > { %v1513_v3 = vld [vmem:[%s359_s20] sm:$0xff]   ;;  %v1514_v4 = vld [vmem:[%s359_s20 + $0x8] sm:$0xff]   ;;  %v1515_v5 = vld [vmem:[%s359_s20 + $0x10] sm:$0xff]  }
  0x19   : > { %1366 = vmatprep.mubr.msk.bf16.mxu0 %vm441_vm0, %v1513_v3  ;;  %v1516_v6 = vld [vmem:[%s359_s20 + $0x18] sm:$0xff]   ;;  %v1517_v7 = vld [vmem:[%s359_s20 + $0x20] sm:$0xff]   ;;  %v1518_v8 = vld [vmem:[%s359_s20 + $0x28] sm:$0xff]  }
  0x1a   : > { %1365 = vmatpush3.bf16.msra.mxu0 %v1512_v1  ;;  %v1519_v9 = vld [vmem:[%s359_s20 + $0x30] sm:$0xff]   ;;  %v1520_v10 = vld [vmem:[%s359_s20 + $0x38] sm:$0xff]   ;;  %1385 = vmatpush3.bf16.msra.mxu1 %v1522_v11  ;;  %s350_s20 = scalar_lea.vmem [#allocation2], %s1248_s18  ;;  %s1539_s18 = scalar_lea.vmem %s1538_s15, 512 }
  0x1b   : > { %1386 = vmatprep.subr.bf16.mxu1 %v1523_v12  ;;  %1406 = vmatprep.subr.bf16.mxu0 %v1525_v14  ;;  %v1529_v11 = vld [vmem:[%s1871_s7 + $0x18] sm:$0xff]   ;;  %s1165_s23 = sshll.u32 %s350_s20, 4  ;;  %s1812_s23 = int_to_ptr.vmem [resolvable:$true] %s1165_s23 }
  0x1c   : > { %s1533_s29 = scalar_lea.vmem %s1812_s23, 256  ;;  %p1540_p1 = scmp.lt.s32.totalorder %s1812_s23, %s1538_s15 }
  0x1d   : > { %1367 = vmatmul.mubr.msk.bf16.vlgmr.msra.gmra.mxu0 %vm441_vm0, %v1514_v4  ;;  %p1534_p12 = scmp.ne.s32.totalorder %s1812_s23, %s1533_s29  ;;  %p1541_p2 = scmp.lt.s32.totalorder %s1539_s18, %s1533_s29 }
  0x1e   : > { %1370 = vmatprep.mubr.msk.bf16.mxu0 %vm441_vm0, %v1515_v5  ;;  %1387 = vmatpush3.bf16.msra.mxu1 %v1523_v12  ;;  %v1530_v12 = vld [vmem:[%s1871_s7 + $0x10] sm:$0xff]  }
  0x1f   : > { %1388 = vmatprep.subr.bf16.mxu1 %v1524_v13  ;;  %1407 = vmatpush3.bf16.msra.mxu0 %v1525_v14  ;;  %p1535_p13 = pnand %p1534_p12, %p1704_p4  ;;  %p1542_p3 = por %p1541_p2, %p1540_p1 }
  0x20   : > { %1408 = vmatprep.subr.bf16.mxu0 %v1526_v15 }
  0x21   : > { %p1536_p0 = pneg %p1535_p13 }
  0x22   : > { %1389 = vmatpush3.bf16.msra.mxu1 %v1524_v13  ;;  %v1531_v13 = vld [vmem:[%s1871_s7 + $0x8] sm:$0xff]  }
  0x23   : > { %1409 = vmatpush3.bf16.msra.mxu0 %v1526_v15  ;;  %1430 = vmatprep.subr.bf16.mxu1 %v1529_v11  ;;  %p1543_p5 = pnand %p1542_p3, %p1536_p0 }
  0x24   : > { %1410 = vmatprep.subr.bf16.mxu0 %v1527_v16 }
  0x25   : > { %1371 = vmatmul.mubr.msk.bf16.gmra.mxu0 %vm441_vm0, %v1516_v6 }
  0x26   : > { %1374 = vmatprep.mubr.msk.bf16.mxu0 %vm441_vm0, %v1517_v7 }
  0x27   : > { %1411 = vmatpush3.bf16.msra.mxu0 %v1527_v16  ;;  %v1270_v16 = vld [vmem:[%s1868_s4] ss:$0 sm:$0xff] }
  0x2d   : > { %1375 = vmatmul.mubr.msk.bf16.gmra.mxu0 %vm441_vm0, %v1518_v8 }
  0x2e   : > { %1378 = vmatprep.mubr.msk.bf16.mxu0 %vm441_vm0, %v1519_v9 }
  0x35   : > { %1379 = vmatmul.mubr.msk.bf16.gmra.mxu0 %vm441_vm0, %v1520_v10  ;;  %v1528_v10 = vld [vmem:[%s1869_s5] sm:$0xff]  }
  0x36   : > { %1412 = vmatprep.subr.bf16.mxu0 %v1528_v10 }
  0x37   : > { %1413 = vmatpush3.bf16.msra.mxu0 %v1528_v10  ;;  %v1283_v10 = vld [vmem:[%s1870_s6] ss:$0 sm:$0xff] }
  0xdd   : > { %v1368_v17 = vpop.f32.mrf.mxu0 }
  0xde   : > { %v509_v23 = vadd.f32 %v1368_v17, %v1251_v19 }
  0xdf   : > { %v500_v18 = vpop.f32.mrf.mxu0 }
  0xe0   : > { %v501_v21 = vadd.f32 %v1251_v19, %v500_v18  ;;  %v565_v30 = vmax.f32 %v509_v23, 0.0 }
  0xe1   : > { %v1369_v20 = vpop.f32.mrf.mxu0 }
  0xe2   : > { %v512_v22 = vadd.f32 %v1369_v20, %v1251_v19  ;;  %v563_v28 = vmax.f32 %v501_v21, 0.0 }
  0xe3   : > { %v503_v24 = vpop.f32.mrf.mxu0 }
  0xe4   : > { %v504_v25 = vadd.f32 %v1251_v19, %v503_v24  ;;  %v566_v26 = vmax.f32 %v512_v22, 0.0 }
  0xe5   : > { %v1372_v27 = vpop.f32.mrf.mxu0 }
  0xe6   : > { %v564_v29 = vmax.f32 %v504_v25, 0.0  ;;  %v525_v31 = vadd.f32 %v1372_v27, %v1251_v19  ;;  %v580_v35 = vpack.c.bf16 %v566_v26, %v565_v30 }
  0xe7   : > { %v516_v32 = vpop.f32.mrf.mxu0 }
  0xe8   : > { %v517_v33 = vadd.f32 %v1251_v19, %v516_v32  ;;  %v579_v34 = vpack.c.bf16 %v564_v29, %v563_v28  ;;  %v569_v38 = vmax.f32 %v525_v31, 0.0 }
  0xe9   : > { %v1373_v36 = vpop.f32.mrf.mxu0 }
  0xea   : > { %v528_v37 = vadd.f32 %v1373_v36, %v1251_v19  ;;  %1390 = vmatprep.mubr.msk.bf16.mxu1 %vm626_vm1, %v579_v34  ;;  %v567_v40 = vmax.f32 %v517_v33, 0.0 }
  0xeb   : > { %v519_v39 = vpop.f32.mrf.mxu0  ;;  %1391 = vmatmul.mubr.msk.bf16.vlgmr.msra.gmra.mxu1 %vm626_vm1, %v580_v35 }
  0xec   : > { %v570_v41 = vmax.f32 %v528_v37, 0.0  ;;  %v520_v42 = vadd.f32 %v1251_v19, %v519_v39  ;;  %1431 = vmatpush3.bf16.msra.mxu1 %v1529_v11 }
  0xed   : > { %v1376_v43 = vpop.f32.mrf.mxu0  ;;  %1432 = vmatprep.subr.bf16.mxu1 %v1530_v12 }
  0xee   : > { %v568_v44 = vmax.f32 %v520_v42, 0.0  ;;  %v582_v45 = vpack.c.bf16 %v570_v41, %v569_v38  ;;  %v541_v46 = vadd.f32 %v1376_v43, %v1251_v19 }
  0xef   : > { %v532_v47 = vpop.f32.mrf.mxu0 }
  0xf0   : > { %v581_v48 = vpack.c.bf16 %v568_v44, %v567_v40  ;;  %v533_v49 = vadd.f32 %v1251_v19, %v532_v47  ;;  %v573_v52 = vmax.f32 %v541_v46, 0.0  ;;  %1433 = vmatpush3.bf16.msra.mxu1 %v1530_v12 }
  0xf1   : > { %v1377_v50 = vpop.f32.mrf.mxu0  ;;  %1434 = vmatprep.subr.bf16.mxu1 %v1531_v13 }
  0xf2   : > { %v544_v51 = vadd.f32 %v1377_v50, %v1251_v19  ;;  %1394 = vmatprep.mubr.msk.bf16.mxu1 %vm626_vm1, %v581_v48  ;;  %v571_v54 = vmax.f32 %v533_v49, 0.0 }
  0xf3   : > { %v535_v53 = vpop.f32.mrf.mxu0  ;;  %1395 = vmatmul.mubr.msk.bf16.gmra.mxu1 %vm626_vm1, %v582_v45 }
  0xf4   : > { %v574_v55 = vmax.f32 %v544_v51, 0.0  ;;  %v536_v56 = vadd.f32 %v1251_v19, %v535_v53  ;;  %1435 = vmatpush3.bf16.msra.mxu1 %v1531_v13 }
  0xf5   : > { %v1380_v57 = vpop.f32.mrf.mxu0 }
  0xf6   : > { %v572_v58 = vmax.f32 %v536_v56, 0.0  ;;  %v584_v59 = vpack.c.bf16 %v574_v55, %v573_v52  ;;  %v557_v60 = vadd.f32 %v1380_v57, %v1251_v19 }
  0xf7   : > { %v548_v61 = vpop.f32.mrf.mxu0 }
  0xf8   : > { %v583_v62 = vpack.c.bf16 %v572_v58, %v571_v54  ;;  %v549_v63 = vadd.f32 %v1251_v19, %v548_v61  ;;  %v577_v2 = vmax.f32 %v557_v60, 0.0 }
  0xf9   : > { %v1381_v0 = vpop.f32.mrf.mxu0 }
  0xfa   : > { %v560_v1 = vadd.f32 %v1381_v0, %v1251_v19  ;;  %1398 = vmatprep.mubr.msk.bf16.mxu1 %vm626_vm1, %v583_v62  ;;  %v575_v4 = vmax.f32 %v549_v63, 0.0 }
  0xfb   : > { %v551_v3 = vpop.f32.mrf.mxu0  ;;  %1399 = vmatmul.mubr.msk.bf16.gmra.mxu1 %vm626_vm1, %v584_v59 }
  0xfc   : > { %v578_v5 = vmax.f32 %v560_v1, 0.0  ;;  %v552_v6 = vadd.f32 %v1251_v19, %v551_v3 }
  0xfe   : > { %v576_v7 = vmax.f32 %v552_v6, 0.0  ;;  %v586_v8 = vpack.c.bf16 %v578_v5, %v577_v2 }
 0x100   : > { %v585_v9 = vpack.c.bf16 %v576_v7, %v575_v4  ;;  %v1532_v7 = vld [vmem:[%s1871_s7] sm:$0xff]  }
 0x101   : > { %1436 = vmatprep.subr.bf16.mxu1 %v1532_v7 }
 0x102   : > { %1402 = vmatprep.mubr.msk.bf16.mxu1 %vm626_vm1, %v585_v9  ;;  %1437 = vmatpush3.bf16.msra.mxu1 %v1532_v7 }
 0x103   : > { %1403 = vmatmul.mubr.msk.bf16.gmra.mxu1 %vm626_vm1, %v586_v8 }
 0x1ab   : > { %v1392_v14 = vpop.f32.mrf.mxu1 }
 0x1ac   : > { %v694_v20 = vadd.f32 %v1392_v14, %v1270_v16 }
 0x1ad   : > { %v685_v15 = vpop.f32.mrf.mxu1 }
 0x1ae   : > { %v686_v18 = vadd.f32 %v1270_v16, %v685_v15  ;;  %v750_v27 = vmax.f32 %v694_v20, 0.0 }
 0x1af   : > { %v1393_v17 = vpop.f32.mrf.mxu1 }
 0x1b0   : > { %v697_v19 = vadd.f32 %v1393_v17, %v1270_v16  ;;  %v748_v25 = vmax.f32 %v686_v18, 0.0 }
 0x1b1   : > { %v688_v21 = vpop.f32.mrf.mxu1 }
 0x1b2   : > { %v689_v22 = vadd.f32 %v1270_v16, %v688_v21  ;;  %v751_v23 = vmax.f32 %v697_v19, 0.0 }
 0x1b3   : > { %v1396_v24 = vpop.f32.mrf.mxu1 }
 0x1b4   : > { %v749_v26 = vmax.f32 %v689_v22, 0.0  ;;  %v765_v30 = vpack.c.bf16 %v751_v23, %v750_v27  ;;  %v710_v34 = vadd.f32 %v1396_v24, %v1270_v16 }
 0x1b5   : > { %v701_v28 = vpop.f32.mrf.mxu1 }
 0x1b6   : > { %v764_v29 = vpack.c.bf16 %v749_v26, %v748_v25  ;;  %v702_v32 = vadd.f32 %v1270_v16, %v701_v28  ;;  %v754_v41 = vmax.f32 %v710_v34, 0.0 }
 0x1b7   : > { %v1397_v31 = vpop.f32.mrf.mxu1 }
 0x1b8   : > { %v713_v33 = vadd.f32 %v1397_v31, %v1270_v16  ;;  %1414 = vmatprep.mubr.msk.bf16.mxu0 %vm626_vm1, %v764_v29  ;;  %v752_v39 = vmax.f32 %v702_v32, 0.0 }
 0x1b9   : > { %v704_v35 = vpop.f32.mrf.mxu1  ;;  %1415 = vmatmul.mubr.msk.bf16.vlgmr.msra.gmra.mxu0 %vm626_vm1, %v765_v30 }
 0x1ba   : > { %v705_v36 = vadd.f32 %v1270_v16, %v704_v35  ;;  %v755_v37 = vmax.f32 %v713_v33, 0.0 }
 0x1bb   : > { %v1400_v38 = vpop.f32.mrf.mxu1 }
 0x1bc   : > { %v753_v40 = vmax.f32 %v705_v36, 0.0  ;;  %v726_v42 = vadd.f32 %v1400_v38, %v1270_v16  ;;  %v767_v46 = vpack.c.bf16 %v755_v37, %v754_v41 }
 0x1bd   : > { %v717_v43 = vpop.f32.mrf.mxu1 }
 0x1be   : > { %v766_v44 = vpack.c.bf16 %v753_v40, %v752_v39  ;;  %v718_v45 = vadd.f32 %v1270_v16, %v717_v43  ;;  %v758_v49 = vmax.f32 %v726_v42, 0.0 }
 0x1bf   : > { %v1401_v47 = vpop.f32.mrf.mxu1 }
 0x1c0   : > { %v729_v48 = vadd.f32 %v1401_v47, %v1270_v16  ;;  %1418 = vmatprep.mubr.msk.bf16.mxu0 %vm626_vm1, %v766_v44  ;;  %v756_v51 = vmax.f32 %v718_v45, 0.0 }
 0x1c1   : > { %v720_v50 = vpop.f32.mrf.mxu1  ;;  %1419 = vmatmul.mubr.msk.bf16.gmra.mxu0 %vm626_vm1, %v767_v46 }
 0x1c2   : > { %v759_v52 = vmax.f32 %v729_v48, 0.0  ;;  %v721_v53 = vadd.f32 %v1270_v16, %v720_v50 }
 0x1c3   : > { %v1404_v54 = vpop.f32.mrf.mxu1 }
 0x1c4   : > { %v757_v55 = vmax.f32 %v721_v53, 0.0  ;;  %v769_v56 = vpack.c.bf16 %v759_v52, %v758_v49  ;;  %v742_v57 = vadd.f32 %v1404_v54, %v1270_v16 }
 0x1c5   : > { %v733_v58 = vpop.f32.mrf.mxu1 }
 0x1c6   : > { %v768_v59 = vpack.c.bf16 %v757_v55, %v756_v51  ;;  %v734_v60 = vadd.f32 %v1270_v16, %v733_v58  ;;  %v762_v63 = vmax.f32 %v742_v57, 0.0 }
 0x1c7   : > { %v1405_v61 = vpop.f32.mrf.mxu1 }
 0x1c8   : > { %v745_v62 = vadd.f32 %v1405_v61, %v1270_v16  ;;  %1422 = vmatprep.mubr.msk.bf16.mxu0 %vm626_vm1, %v768_v59  ;;  %v760_v1 = vmax.f32 %v734_v60, 0.0 }
 0x1c9   : > { %v736_v0 = vpop.f32.mrf.mxu1  ;;  %1423 = vmatmul.mubr.msk.bf16.gmra.mxu0 %vm626_vm1, %v769_v56 }
 0x1ca   : > { %v763_v2 = vmax.f32 %v745_v62, 0.0  ;;  %v737_v3 = vadd.f32 %v1270_v16, %v736_v0 }
 0x1cc   : > { %v761_v4 = vmax.f32 %v737_v3, 0.0  ;;  %v771_v5 = vpack.c.bf16 %v763_v2, %v762_v63  ;;  %v1296_v2 = vld [vmem:[%s1872_s8] ss:$0 sm:$0xff] }
 0x1ce   : > { %v770_v6 = vpack.c.bf16 %v761_v4, %v760_v1 }
 0x1d0   : > { %1426 = vmatprep.mubr.msk.bf16.mxu0 %vm626_vm1, %v770_v6 }
 0x1d1   : > { %1427 = vmatmul.mubr.msk.bf16.gmra.mxu0 %vm626_vm1, %v771_v5 }
 0x279   : > { %v1416_v8 = vpop.f32.mrf.mxu0 }
 0x27a   : > { %v878_v14 = vadd.f32 %v1416_v8, %v1283_v10 }
 0x27b   : > { %v869_v9 = vpop.f32.mrf.mxu0 }
 0x27c   : > { %v870_v12 = vadd.f32 %v1283_v10, %v869_v9  ;;  %v934_v21 = vmax.f32 %v878_v14, 0.0 }
 0x27d   : > { %v1417_v11 = vpop.f32.mrf.mxu0 }
 0x27e   : > { %v881_v13 = vadd.f32 %v1417_v11, %v1283_v10  ;;  %v932_v19 = vmax.f32 %v870_v12, 0.0 }
 0x27f   : > { %v872_v15 = vpop.f32.mrf.mxu0 }
 0x280   : > { %v873_v16 = vadd.f32 %v1283_v10, %v872_v15  ;;  %v935_v17 = vmax.f32 %v881_v13, 0.0 }
 0x281   : > { %v1420_v18 = vpop.f32.mrf.mxu0 }
 0x282   : > { %v933_v20 = vmax.f32 %v873_v16, 0.0  ;;  %v949_v24 = vpack.c.bf16 %v935_v17, %v934_v21  ;;  %v894_v28 = vadd.f32 %v1420_v18, %v1283_v10 }
 0x283   : > { %v885_v22 = vpop.f32.mrf.mxu0 }
 0x284   : > { %v948_v23 = vpack.c.bf16 %v933_v20, %v932_v19  ;;  %v886_v26 = vadd.f32 %v1283_v10, %v885_v22  ;;  %v938_v35 = vmax.f32 %v894_v28, 0.0 }
 0x285   : > { %v1421_v25 = vpop.f32.mrf.mxu0 }
 0x286   : > { %v897_v27 = vadd.f32 %v1421_v25, %v1283_v10  ;;  %1438 = vmatprep.mubr.msk.bf16.mxu1 %vm626_vm1, %v948_v23  ;;  %v936_v33 = vmax.f32 %v886_v26, 0.0 }
 0x287   : > { %v888_v29 = vpop.f32.mrf.mxu0  ;;  %1439 = vmatmul.mubr.msk.bf16.vlgmr.msra.gmra.mxu1 %vm626_vm1, %v949_v24 }
 0x288   : > { %v889_v30 = vadd.f32 %v1283_v10, %v888_v29  ;;  %v939_v31 = vmax.f32 %v897_v27, 0.0 }
 0x289   : > { %v1424_v32 = vpop.f32.mrf.mxu0 }
 0x28a   : > { %v937_v34 = vmax.f32 %v889_v30, 0.0  ;;  %v951_v38 = vpack.c.bf16 %v939_v31, %v938_v35  ;;  %v910_v42 = vadd.f32 %v1424_v32, %v1283_v10 }
 0x28b   : > { %v901_v36 = vpop.f32.mrf.mxu0 }
 0x28c   : > { %v950_v37 = vpack.c.bf16 %v937_v34, %v936_v33  ;;  %v902_v40 = vadd.f32 %v1283_v10, %v901_v36  ;;  %v942_v49 = vmax.f32 %v910_v42, 0.0 }
 0x28d   : > { %v1425_v39 = vpop.f32.mrf.mxu0 }
 0x28e   : > { %v913_v41 = vadd.f32 %v1425_v39, %v1283_v10  ;;  %1442 = vmatprep.mubr.msk.bf16.mxu1 %vm626_vm1, %v950_v37  ;;  %v940_v47 = vmax.f32 %v902_v40, 0.0 }
 0x28f   : > { %v904_v43 = vpop.f32.mrf.mxu0  ;;  %1443 = vmatmul.mubr.msk.bf16.gmra.mxu1 %vm626_vm1, %v951_v38 }
 0x290   : > { %v905_v44 = vadd.f32 %v1283_v10, %v904_v43  ;;  %v943_v45 = vmax.f32 %v913_v41, 0.0 }
 0x291   : > { %v1428_v46 = vpop.f32.mrf.mxu0 }
 0x292   : > { %v941_v48 = vmax.f32 %v905_v44, 0.0  ;;  %v926_v50 = vadd.f32 %v1428_v46, %v1283_v10  ;;  %v953_v54 = vpack.c.bf16 %v943_v45, %v942_v49 }
 0x293   : > { %v917_v51 = vpop.f32.mrf.mxu0 }
 0x294   : > { %v952_v52 = vpack.c.bf16 %v941_v48, %v940_v47  ;;  %v918_v53 = vadd.f32 %v1283_v10, %v917_v51  ;;  %v946_v57 = vmax.f32 %v926_v50, 0.0 }
 0x295   : > { %v1429_v55 = vpop.f32.mrf.mxu0 }
 0x296   : > { %v929_v56 = vadd.f32 %v1429_v55, %v1283_v10  ;;  %1446 = vmatprep.mubr.msk.bf16.mxu1 %vm626_vm1, %v952_v52  ;;  %v944_v59 = vmax.f32 %v918_v53, 0.0 }
 0x297   : > { %v920_v58 = vpop.f32.mrf.mxu0  ;;  %1447 = vmatmul.mubr.msk.bf16.gmra.mxu1 %vm626_vm1, %v953_v54 }
 0x298   : > { %v947_v60 = vmax.f32 %v929_v56, 0.0  ;;  %v921_v61 = vadd.f32 %v1283_v10, %v920_v58 }
 0x29a   : > { %v945_v62 = vmax.f32 %v921_v61, 0.0  ;;  %v955_v63 = vpack.c.bf16 %v947_v60, %v946_v57 }
 0x29c   : > { %v954_v0 = vpack.c.bf16 %v945_v62, %v944_v59 }
 0x29e   : > { %1450 = vmatprep.mubr.msk.bf16.mxu1 %vm626_vm1, %v954_v0 }
 0x29f   : > { %1451 = vmatmul.mubr.msk.bf16.gmra.mxu1 %vm626_vm1, %v955_v63 }
 0x347   : > { %v1440_v1 = vpop.f32.mrf.mxu1 }
 0x348   : > { %v1062_v9 = vadd.f32 %v1440_v1, %v1296_v2 }
 0x349   : > { %v1053_v3 = vpop.f32.mrf.mxu1 }
 0x34a   : > { %v1054_v4 = vadd.f32 %v1296_v2, %v1053_v3 }
 0x34b   : > { %v1441_v5 = vpop.f32.mrf.mxu1 }
 0x34c   : > { %1116 = vxpose.xlu0.b32.start [1/16] (narrow) %v1054_v4, 16  ;;  %v1065_v11 = vadd.f32 %v1441_v5, %v1296_v2 }
 0x34d   : > { %v1056_v6 = vpop.f32.mrf.mxu1 }
 0x34e   : > { %v1057_v7 = vadd.f32 %v1296_v2, %v1056_v6 }
 0x34f   : > { %v1444_v8 = vpop.f32.mrf.mxu1 }
 0x350   : > { %1117 = vxpose.xlu0.b32.cont [2/16] (narrow) %v1057_v7, 16  ;;  %v1078_v17 = vadd.f32 %v1444_v8, %v1296_v2 }
 0x351   : > { %v1069_v10 = vpop.f32.mrf.mxu1 }
 0x352   : > { %v1070_v13 = vadd.f32 %v1296_v2, %v1069_v10 }
 0x353   : > { %v1445_v12 = vpop.f32.mrf.mxu1 }
 0x354   : > { %1118 = vxpose.xlu0.b32.cont [3/16] (narrow) %v1062_v9, 16  ;;  %v1081_v19 = vadd.f32 %v1445_v12, %v1296_v2 }
 0x355   : > { %v1072_v14 = vpop.f32.mrf.mxu1 }
 0x356   : > { %v1073_v15 = vadd.f32 %v1296_v2, %v1072_v14 }
 0x357   : > { %v1448_v16 = vpop.f32.mrf.mxu1 }
 0x358   : > { %1119 = vxpose.xlu0.b32.cont [4/16] (narrow) %v1065_v11, 16  ;;  %v1094_v25 = vadd.f32 %v1448_v16, %v1296_v2 }
 0x359   : > { %v1085_v18 = vpop.f32.mrf.mxu1 }
 0x35a   : > { %v1086_v21 = vadd.f32 %v1296_v2, %v1085_v18 }
 0x35b   : > { %v1449_v20 = vpop.f32.mrf.mxu1 }
 0x35c   : > { %1120 = vxpose.xlu0.b32.cont [5/16] (narrow) %v1070_v13, 16  ;;  %v1097_v27 = vadd.f32 %v1449_v20, %v1296_v2 }
 0x35d   : > { %v1088_v22 = vpop.f32.mrf.mxu1 }
 0x35e   : > { %v1089_v23 = vadd.f32 %v1296_v2, %v1088_v22 }
 0x35f   : > { %v1452_v24 = vpop.f32.mrf.mxu1 }
 0x360   : > { %1121 = vxpose.xlu0.b32.cont [6/16] (narrow) %v1073_v15, 16  ;;  %v1110_v32 = vadd.f32 %v1452_v24, %v1296_v2 }
 0x361   : > { %v1101_v26 = vpop.f32.mrf.mxu1 }
 0x362   : > { %v1102_v29 = vadd.f32 %v1296_v2, %v1101_v26 }
 0x363   : > { %v1453_v28 = vpop.f32.mrf.mxu1 }
 0x364   : > { %1122 = vxpose.xlu0.b32.cont [7/16] (narrow) %v1078_v17, 16  ;;  %v1113_v33 = vadd.f32 %v1453_v28, %v1296_v2 }
 0x365   : > { %v1104_v30 = vpop.f32.mrf.mxu1 }
 0x366   : > { %v1105_v31 = vadd.f32 %v1296_v2, %v1104_v30 }
 0x368   : > { %1123 = vxpose.xlu0.b32.cont [8/16] (narrow) %v1081_v19, 16 }
 0x36c   : > { %1124 = vxpose.xlu0.b32.cont [9/16] (narrow) %v1086_v21, 16 }
 0x370   : > { %1125 = vxpose.xlu0.b32.cont [10/16] (narrow) %v1089_v23, 16 }
 0x374   : > { %1126 = vxpose.xlu0.b32.cont [11/16] (narrow) %v1094_v25, 16 }
 0x378   : > { %1127 = vxpose.xlu0.b32.cont [12/16] (narrow) %v1097_v27, 16 }
 0x37c   : > { %1128 = vxpose.xlu0.b32.cont [13/16] (narrow) %v1102_v29, 16 }
 0x380   : > { %1129 = vxpose.xlu0.b32.cont [14/16] (narrow) %v1105_v31, 16 }
 0x384   : > { %1130 = vxpose.xlu0.b32.cont [15/16] (narrow) %v1110_v32, 16 }
 0x388   : > { %1131 = vxpose.xlu0.b32.end [16/16] (narrow) %v1113_v33, 16 }
 0x3c8   : > { %v1132_v34 = vpop.trf.xlu0 }
 0x3c9   : > { %1148 = vst [vmem:[%s350_s20] sm:$0xff] %v1132_v34 }
 0x3cc   : > { %v1133_v35 = vpop.trf.xlu0 }
 0x3cd   : > { %1149 = vst [vmem:[%s350_s20 + $0x8] sm:$0xff] %v1133_v35 }
 0x3ce   : > { %1546 = shalt.err (!%p1543_p5)
}
 0x3cf   : > { %s1547_s16 = scalar_lea.hbm %s1817_s27, 256  ;;  %s1551_s25 = scalar_lea.hbm %s1873_s9, 512 }
 0x3d0   : > { %p1548_p6 = scmp.ne.s32.totalorder %s1817_s27, %s1547_s16  ;;  %p1552_p10 = scmp.lt.s32.totalorder %s1817_s27, %s1873_s9 }
 0x3d1   : > { %p1553_p11 = scmp.lt.s32.totalorder %s1551_s25, %s1547_s16 }
 0x3d2   : > { %p1549_p7 = pnand %p1548_p6, %p1704_p4 }
 0x3d3   : > { %p1554_p12 = por %p1553_p11, %p1552_p10 }
 0x3d4   : > { %p1550_p9 = pneg %p1549_p7 }
 0x3d6   : > { %p1555_p13 = pnand %p1554_p12, %p1550_p9 }
 0x3d8   : > { %1558 = shalt.err (!%p1555_p13)
}
 0x3d9   : > { %s1612_s29 = smov 128   ;;  %s1613_s15 = smov 8  }
 0x3da   : > { %1454 = dma.vmem_to_hbm [thread:$0]  (%p1704_p4), %s1812_s23, 256, %s1817_s27, %s1819_s28, %s1612_s29, %s1612_s29, %s1613_s15  }
 0x3db PF: > { %p1460_p0 = scmp.ge.s32.totalorder %s1609_s14, 2  ;;  %s1180_s18 = sand.u32 1, %s1589_s30  }
 0x3dc   : > { %s1181_s16 = scalar_lea.sflag [#allocation3], %s1180_s18 }
 0x3dd   : > { %p1457_p1 = pnand %p1460_p0, %p1711_p8 }
 0x3df   : > { %p1458_p2 = pneg %p1457_p1 }
 0x3e1   : > { %1584 = dma.done.wait (%p1458_p2), %s1181_s16, 256  }
 0x3e2   : > { %1586 = vsyncadd (%p1458_p2), %s1181_s16, 4294967040  ;;  %s22_s14 = sadd.s32 1, %s1609_s14   ;;  %s1876_s30 = smov %s1593_s10 }
 0x3e3   : > { %p19_p3 = scmp.ge.s32.totalorder %s22_s14, 4   ;;  %s1877_s10 = smov %s1597_s11 }
 0x3e4   : > { %s1878_s11 = smov %s1717_s22  ;;  %s1879_s12 = smov %s1605_s13 }
 0x3e5   : > { %s1880_s13 = smov %s1882_s17  ;;  %21 = sbr.rel (!%p19_p3) target bundleno = 4 (0x4), region = 91 }
 0x3ea   :  { %1186 = vsyncpa [#allocation3], 1 }
 0x3eb   :  { %1188 = vsyncpa [#allocation3 + $0x1], 1 }

</bundles_post_ra>
